<compile_context>
chip_gen: v6e
topology: v6e:2x2x1
jax: 0.10.0
libtpu: 0.0.40
codegen_flags: <defaults>
</compile_context>

<pallas_src>
from functools import partial
import inspect

import jax
import jax.numpy as jnp
from jax.experimental import pallas as pl
from jax.experimental.pallas import tpu as pltpu


def _round_up(n, m):
    return ((n + m - 1) // m) * m


# ---------------------------------------------------------------------------
# Generation-aware sizing
# ---------------------------------------------------------------------------
def _tpu_generation_info():
    """Best-effort (physical_vmem_bytes, tensorcores_per_chip, target_rows).

    target_rows ~ rows needed so the (rows, dim) x (dim, dim) weight-streamed
    matmul hides the per-step blk_w HBM DMA (peak bf16 FLOP/s / HBM BW).
    """
    kind = ""
    try:
        kind = jax.devices()[0].device_kind.lower()
    except Exception:
        pass
    table = {
        "v7": (64 * 2**20, 2, 384),
        "v6": (128 * 2**20, 1, 768),
        "v5": (128 * 2**20, 1, 256),
        "v4": (128 * 2**20, 1, 512),
        "v3": (16 * 2**20, 1, 256),
        "v2": (16 * 2**20, 1, 256),
    }
    phys, num_tc, target_rows = 64 * 2**20, 1, 512   # unknown-generation fallback
    for tag, vals in table.items():
        if tag in kind:
            phys, num_tc, target_rows = vals
            break
    try:
        phys = min(phys, int(pltpu.get_tpu_info().vmem_capacity_bytes))
    except Exception:
        pass
    return phys, num_tc, target_rows


def _supports_pipeline_mode():
    try:
        return "pipeline_mode" in inspect.signature(pl.BlockSpec).parameters
    except (TypeError, ValueError):
        return False


def _footprint_bytes(batch_tile, *, PP, Kp, dim_p, depth, blk_resident, n_wbuf):
    """Estimated VMEM footprint of the main kernel (bytes)."""
    rows = batch_tile * PP
    byt = rows * dim_p * 4                          # h scratch (f32)
    byt += 2 * rows * Kp * 2                        # patches block, double-buffered bf16
    byt += Kp * dim_p * 2                           # stem_w resident (bf16)
    byt += 3 * dim_p * 4                            # stem bias/scale/shift
    byt += PP * dim_p * 4                           # pos (un-tiled)
    wblk = dim_p * dim_p * 2 + 3 * dim_p * 4        # one depth slice of weights + b/s/t
    byt += depth * wblk if blk_resident else n_wbuf * wblk
    byt += 2 * batch_tile * dim_p * 4               # pooled output, double-buffered
    byt += 2 * 2**20                                # slack for compiler temporaries
    return byt


def _choose_tiling(B, PP, Kp, dim_p, depth, *, target_rows, num_tc, budget,
                   batch_tile=None, force_blk_resident=None):
    def fits(bt, blk_resident, n_wbuf=2):
        return _footprint_bytes(bt, PP=PP, Kp=Kp, dim_p=dim_p, depth=depth,
                                blk_resident=blk_resident, n_wbuf=n_wbuf) <= budget

    def valid(bt):
        if bt < 1 or B % bt:
            return False
        rows = bt * PP
        if (B // bt) > 1 and rows % 8:          # row blocks must respect (8,128) tiling
            return False
        return fits(bt, blk_resident=False)

    if batch_tile is None:
        cands = [bt for bt in range(1, B + 1) if valid(bt)]
        if not cands:
            raise ValueError(
                f"ConvMixer kernel: no batch tile fits the VMEM budget ({budget} B); "
                "reduce dim or the number of patches.")

        def score(bt):
            n_bt = B // bt
            rows = bt * PP
            # 1) keep every TensorCore busy (v7x: prefer n_bt even),
            # 2) reach the roofline row target so the streamed weight DMA hides,
            # 3) then grow rows toward the VMEM budget.
            return ((n_bt % num_tc) == 0, rows >= target_rows, rows)

        batch_tile = max(cands, key=score)
    elif not valid(batch_tile):
        raise ValueError(f"requested batch_tile={batch_tile} is invalid or does "
                         "not fit in the VMEM budget")

    n_bt = B // batch_tile
    if force_blk_resident is None:
        blk_resident = (n_bt > 1) and fits(batch_tile, blk_resident=True)
    else:
        blk_resident = bool(force_blk_resident)
        if blk_resident and not fits(batch_tile, blk_resident=True):
            raise ValueError("resident block weights do not fit in the VMEM budget")
    return batch_tile, n_bt, blk_resident


# ---------------------------------------------------------------------------
# Kernels
# ---------------------------------------------------------------------------
def convmixer_body_kernel(patches_ref, stem_w_ref, stem_bst_ref, pos_ref,
                          blk_w_ref, blk_bst_ref, pooled_ref, h_ref,
                          *, depth, batch_tile, pp, blk_resident):
    # TODO(synk): PyTorch nn.GELU() defaults to the exact erf form; the tanh
    # approximation is used here for guaranteed Mosaic lowering (|diff| ~1e-3).
    gelu = partial(jax.nn.gelu, approximate=True)
    d = pl.program_id(1)

    # --- depth step 0: stem patch-conv (one MXU matmul) + GELU + folded BN +
    # --- positional embedding (broadcast in-kernel, pos is NOT pre-tiled).
    @pl.when(d == 0)
    def _stem():
        h = jnp.dot(patches_ref[...], stem_w_ref[...],
                    preferred_element_type=jnp.float32)
        h = gelu(h + stem_bst_ref[0:1, :])
        h = h * stem_bst_ref[1:2, :] + stem_bst_ref[2:3, :]
        h_ref[...] = h + jnp.tile(pos_ref[...], (batch_tile, 1))

    # --- one residual 1x1-conv block per depth grid step. Weights are either
    # --- streamed (one depth slice per step, multi-buffered DMA) or fully
    # --- VMEM-resident (indexed with the depth grid position).
    w_i = d if blk_resident else 0
    w = blk_w_ref[w_i]                       # (dim_p, dim_p) bf16
    bst = blk_bst_ref[w_i]                   # (3, dim_p) f32: bias / scale / shift
    h = h_ref[...]
    z = jnp.dot(h.astype(jnp.bfloat16), w, preferred_element_type=jnp.float32)
    z = gelu(z + bst[0:1, :])
    z = z * bst[1:2, :] + bst[2:3, :]
    h_ref[...] = h + z

    # --- last depth step: tanh -> mean over patches, reduced per batch element
    # --- so the full (rows, dim) tanh'd slab is never materialized.
    @pl.when(d == depth - 1)
    def _pool():
        inv_pp = 1.0 / pp
        chunks = [
            jnp.sum(jnp.tanh(h_ref[b * pp:(b + 1) * pp, :]), axis=0,
                    keepdims=True) * inv_pp
            for b in range(batch_tile)]
        pooled_ref[0] = chunks[0] if batch_tile == 1 else jnp.concatenate(chunks, 0)


def convmixer_tail_kernel(feat_ref, mlp_w_ref, mlp_b_ref, head_w_ref, head_b_ref,
                          out_ref, *, depth_mlp):
    f = feat_ref[...]                                          # (B, dim_p) f32
    for i in range(depth_mlp):                                 # static, unrolled
        f = jnp.maximum(
            jnp.dot(f.astype(jnp.bfloat16), mlp_w_ref[i],
                    preferred_element_type=jnp.float32) + mlp_b_ref[i], 0.0)
    out_ref[...] = (jnp.dot(f.astype(jnp.bfloat16), head_w_ref[...],
                            preferred_element_type=jnp.float32)
                    + head_b_ref[...]).astype(out_ref.dtype)


# ---------------------------------------------------------------------------
# Wrapper
# ---------------------------------------------------------------------------
def convmixer_forward(x, params, *, patch_size, depth, depth_mlp, num_classes,
                      batch_tile=None, force_blk_resident=None):
    B, C, H, W = x.shape
    # The reference module's padding path only triggers when
    # input_size % patch_size != 0; at these shapes it is a no-op.
    assert H % patch_size == 0 and W % patch_size == 0
    assert depth >= 1
    P = H // patch_size
    PP = P * P
    K = C * patch_size * patch_size
    dim = params["stem_w"].shape[1]

    # lane-dense padded sizes (multiples of 128 on the last axis)
    Kp = _round_up(K, 128)
    dim_p = _round_up(dim, 128)
    ncp = _round_up(num_classes, 128)

    # -------- generation-aware sizing --------
    phys_vmem, num_tc, target_rows = _tpu_generation_info()
    headroom = 8 * 2**20
    budget = max(min(phys_vmem - headroom, 100 * 2**20), 32 * 2**20)

    batch_tile, n_bt, blk_resident = _choose_tiling(
        B, PP, Kp, dim_p, depth, target_rows=target_rows, num_tc=num_tc,
        budget=budget, batch_tile=batch_tile,
        force_blk_resident=force_blk_resident)
    rows = batch_tile * PP

    use_buffered3 = (
        (not blk_resident) and depth >= 3
        and hasattr(pl, "Buffered") and _supports_pipeline_mode()
        and _footprint_bytes(batch_tile, PP=PP, Kp=Kp, dim_p=dim_p, depth=depth,
                             blk_resident=False, n_wbuf=3) <= budget)

    # -------- operand preparation (pad + pack + cast) --------
    def pad_to(a, shape):
        pads = [(0, t - s) for s, t in zip(a.shape, shape)]
        return a if all(p == (0, 0) for p in pads) else jnp.pad(a, pads)

    # patchify NCHW -> (B*PP, K); per-patch ordering (c, kh, kw) matches
    # Conv2d weight.reshape(dim, C*p*p), so the stem conv is one big matmul.
    patches = x.reshape(B, C, P, patch_size, P, patch_size)
    patches = patches.transpose(0, 2, 4, 1, 3, 5).reshape(B * PP, K)
    patches = pad_to(patches, (B * PP, Kp)).astype(jnp.bfloat16)

    stem_w = pad_to(params["stem_w"], (Kp, dim_p)).astype(jnp.bfloat16)
    stem_bst = pad_to(jnp.concatenate(
        [params["stem_b"], params["stem_s"], params["stem_t"]], axis=0),
        (3, dim_p))                                           # (3, dim_p)
    pos = pad_to(params["pos"], (PP, dim_p))                  # NOT batch-tiled
    blk_w = pad_to(params["blk_w"], (depth, dim_p, dim_p)).astype(jnp.bfloat16)
    blk_bst = pad_to(jnp.concatenate(
        [params["blk_b"], params["blk_s"], params["blk_t"]], axis=1),
        (depth, 3, dim_p))                                    # (depth, 3, dim_p)

    if depth_mlp > 0:
        mlp_w = pad_to(params["mlp_w"], (depth_mlp, dim_p, dim_p)).astype(jnp.bfloat16)
        mlp_b = pad_to(params["mlp_b"], (depth_mlp, 1, dim_p))
    else:  # dummy operands; the in-kernel loop runs zero times
        mlp_w = jnp.zeros((1, dim_p, dim_p), jnp.bfloat16)
        mlp_b = jnp.zeros((1, 1, dim_p), jnp.float32)
    head_w = pad_to(params["head_w"], (dim_p, ncp)).astype(jnp.bfloat16)
    head_b = pad_to(params["head_b"], (1, ncp))

    # -------- BlockSpecs --------
    if blk_resident:
        blk_w_spec = pl.BlockSpec((depth, dim_p, dim_p), lambda bi, d: (0, 0, 0))
        blk_bst_spec = pl.BlockSpec((depth, 3, dim_p), lambda bi, d: (0, 0, 0))
    else:
        kw = dict(pipeline_mode=pl.Buffered(3)) if use_buffered3 else {}
        blk_w_spec = pl.BlockSpec((1, dim_p, dim_p), lambda bi, d: (d, 0, 0), **kw)
        blk_bst_spec = pl.BlockSpec((1, 3, dim_p), lambda bi, d: (d, 0, 0), **kw)

    in_specs = [
        pl.BlockSpec((rows, Kp), lambda bi, d: (bi, 0)),       # patches (per batch tile)
        pl.BlockSpec((Kp, dim_p), lambda bi, d: (0, 0)),       # stem_w   (resident)
        pl.BlockSpec((3, dim_p), lambda bi, d: (0, 0)),        # stem b/s/t (resident)
        pl.BlockSpec((PP, dim_p), lambda bi, d: (0, 0)),       # pos      (resident)
        blk_w_spec,                                            # block weights
        blk_bst_spec,                                          # block b/s/t
    ]
    out_specs = pl.BlockSpec((1, batch_tile, dim_p), lambda bi, d: (bi, 0, 0))

    # -------- cost estimate (accounts for per-batch-tile weight re-fetches) ----
    streamed_factor = 1 if blk_resident else n_bt
    bytes_in = (patches.size * 2 + stem_w.size * 2 + stem_bst.size * 4 + pos.size * 4
                + streamed_factor * (blk_w.size * 2 + blk_bst.size * 4))
    body_cost = pl.CostEstimate(
        flops=2 * B * PP * dim_p * (Kp + depth * dim_p),
        transcendentals=B * PP * dim_p * (depth + 2),
        bytes_accessed=int(bytes_in + B * dim_p * 4))

    body = partial(convmixer_body_kernel, depth=depth, batch_tile=batch_tile,
                   pp=PP, blk_resident=blk_resident)

    pooled = pl.pallas_call(
        body,
        out_shape=jax.ShapeDtypeStruct((n_bt, batch_tile, dim_p), jnp.float32),
        grid_spec=pltpu.PrefetchScalarGridSpec(
            num_scalar_prefetch=0,
            grid=(n_bt, depth),
            in_specs=in_specs,
            out_specs=out_specs,
            scratch_shapes=[pltpu.VMEM((rows, dim_p), jnp.float32)]),
        compiler_params=pltpu.CompilerParams(
            dimension_semantics=("parallel", "arbitrary"),
            vmem_limit_bytes=int(budget)),
        cost_estimate=body_cost,
    )(patches, stem_w, stem_bst, pos, blk_w, blk_bst)

    feat = pooled.reshape(B, dim_p)                            # (B, dim_p) f32

    # -------- tiny tail kernel: MLP (Linear+ReLU)^depth_mlp -> head Linear ----
    tail_cost = pl.CostEstimate(
        flops=2 * B * dim_p * (depth_mlp * dim_p + ncp),
        transcendentals=0,
        bytes_accessed=int(feat.size * 4 + mlp_w.size * 2 + mlp_b.size * 4
                           + head_w.size * 2 + head_b.size * 4 + B * ncp * 4))
    out = pl.pallas_call(
        partial(convmixer_tail_kernel, depth_mlp=depth_mlp),
        out_shape=jax.ShapeDtypeStruct((B, ncp), jnp.float32),
        cost_estimate=tail_cost,
    )(feat, mlp_w, mlp_b, head_w, head_b)

    return out[:, :num_classes]


# ---------------------------------------------------------------------------
# Parameters + pure-JAX reference
# ---------------------------------------------------------------------------
def make_params(key, *, dim, depth, depth_mlp, in_chans, patch_size, n_patch,
                num_classes):
    K = in_chans * patch_size * patch_size
    PP = n_patch * n_patch
    ks = jax.random.split(key, 20)
    eps = 1e-5

    def rnd(k, shape, scale=0.1):
        return (scale * jax.random.normal(k, shape)).astype(jnp.float32)

    def bn_fold(gamma, beta, mean, var):
        s = gamma / jnp.sqrt(var + eps)
        return s, beta - mean * s

    # stem conv weight pre-transposed to (K, dim) = Conv2d W.reshape(dim, K).T
    stem_w = rnd(ks[0], (K, dim))
    stem_b = rnd(ks[1], (1, dim))
    stem_s, stem_t = bn_fold(
        1.0 + rnd(ks[2], (1, dim)), rnd(ks[3], (1, dim)),
        rnd(ks[4], (1, dim)),
        1.0 + 0.1 * jnp.abs(jax.random.normal(ks[5], (1, dim))))

    # pos_embedding ~ randn(1, dim, P, P), stored channel-last & grid-flattened
    pos = jax.random.normal(ks[6], (PP, dim), jnp.float32)

    blk_w = rnd(ks[7], (depth, dim, dim))       # 1x1 conv weights, pre-transposed
    blk_b = rnd(ks[8], (depth, 1, dim))
    blk_s, blk_t = bn_fold(
        1.0 + rnd(ks[9], (depth, 1, dim)), rnd(ks[10], (depth, 1, dim)),
        rnd(ks[11], (depth, 1, dim)),
        1.0 + 0.1 * jnp.abs(jax.random.normal(ks[12], (depth, 1, dim))))

    mlp_w = rnd(ks[13], (depth_mlp, dim, dim))  # Linear weights, pre-transposed
    mlp_b = rnd(ks[14], (depth_mlp, 1, dim))

    head_w = rnd(ks[15], (dim, num_classes))    # Linear weight, pre-transposed
    head_b = rnd(ks[16], (1, num_classes))

    return dict(stem_w=stem_w, stem_b=stem_b, stem_s=stem_s, stem_t=stem_t,
                pos=pos, blk_w=blk_w, blk_b=blk_b, blk_s=blk_s, blk_t=blk_t,
                mlp_w=mlp_w, mlp_b=mlp_b, head_w=head_w, head_b=head_b)


def convmixer_reference(x, params, *, patch_size, depth, depth_mlp):
    """Pure-JAX (f32) reference of the same forward pass (tanh-approx GELU)."""
    B, C, H, W = x.shape
    P = H // patch_size
    PP = P * P
    K = C * patch_size * patch_size
    gelu = partial(jax.nn.gelu, approximate=True)
    patches = x.reshape(B, C, P, patch_size, P, patch_size)
    patches = patches.transpose(0, 2, 4, 1, 3, 5).reshape(B * PP, K)
    h = gelu(patches @ params["stem_w"] + params["stem_b"])
    h = h * params["stem_s"] + params["stem_t"]
    h = h.reshape(B, PP, -1) + params["pos"][None]
    for i in range(depth):
        z = gelu(h @ params["blk_w"][i] + params["blk_b"][i])
        z = z * params["blk_s"][i] + params["blk_t"][i]
        h = h + z
    feat = jnp.tanh(h).mean(axis=1)                             # (B, dim)
    for i in range(depth_mlp):
        feat = jnp.maximum(feat @ params["mlp_w"][i] + params["mlp_b"][i], 0.0)
    return feat @ params["head_w"] + params["head_b"]


# ---------------------------------------------------------------------------
if __name__ == "__main__":
    # small, consistent configuration
    B, in_chans, input_size = 2, 3, 16
    patch_size = 4                       # input_size % patch_size == 0 -> no padding
    dim, depth, depth_mlp = 32, 2, 3
    num_classes = 10
    n_patch = input_size // patch_size

    key = jax.random.PRNGKey(0)
    kx, kp = jax.random.split(key)
    x = jax.random.normal(kx, (B, in_chans, input_size, input_size), jnp.float32)
    params = make_params(kp, dim=dim, depth=depth, depth_mlp=depth_mlp,
                         in_chans=in_chans, patch_size=patch_size,
                         n_patch=n_patch, num_classes=num_classes)

    ref = convmixer_reference(x, params, patch_size=patch_size, depth=depth,
                              depth_mlp=depth_mlp)

    # (a) auto tiling (single batch tile here -> streamed block weights)
    out_a = jax.block_until_ready(
        convmixer_forward(x, params, patch_size=patch_size, depth=depth,
                          depth_mlp=depth_mlp, num_classes=num_classes))
    # (b) forced multi-batch-tile + VMEM-resident block weights (exercises the
    #     "parallel" batch axis and the dynamically indexed resident path)
    out_b = jax.block_until_ready(
        convmixer_forward(x, params, patch_size=patch_size, depth=depth,
                          depth_mlp=depth_mlp, num_classes=num_classes,
                          batch_tile=1, force_blk_resident=True))

    for out in (out_a, out_b):
        assert out.shape == (B, num_classes) and out.dtype == jnp.float32
        assert bool(jnp.all(jnp.isfinite(out)))
        assert bool(jnp.allclose(out, ref, atol=5e-2, rtol=5e-2)), \
            float(jnp.max(jnp.abs(out - ref)))
    print("KERNEL_OK")
</pallas_src>

<mosaic_0001>
module attributes {stable_mosaic.version = 11 : i64} {
  func.func @convmixer_body_kernel(%arg0: i32, %arg1: i32, %arg2: memref<32x128xbf16, #tpu.memory_space<vmem>>, %arg3: memref<128x128xbf16, #tpu.memory_space<vmem>>, %arg4: memref<3x128xf32, #tpu.memory_space<vmem>>, %arg5: memref<16x128xf32, #tpu.memory_space<vmem>>, %arg6: memref<1x128x128xbf16, #tpu.memory_space<vmem>>, %arg7: memref<1x3x128xf32, #tpu.memory_space<vmem>>, %arg8: memref<1x2x128xf32, #tpu.memory_space<vmem>>, %arg9: memref<32x128xf32, #tpu.memory_space<vmem>>) attributes {dimension_semantics = [#tpu.dimension_semantics<parallel>, #tpu.dimension_semantics<arbitrary>], iteration_bounds = array<i64: 1, 2>, scalar_prefetch = 0 : i64, scratch_operands = 1 : i64, tpu.core_type = #tpu.core_type<tc>, window_params = [{transform_indices = @transform_0, window_bounds = array<i64: 32, 128>}, {pipeline_mode = #tpu.pipeline_mode<synchronous>, transform_indices = @transform_1, window_bounds = array<i64: 128, 128>}, {pipeline_mode = #tpu.pipeline_mode<synchronous>, transform_indices = @transform_2, window_bounds = array<i64: 3, 128>}, {pipeline_mode = #tpu.pipeline_mode<synchronous>, transform_indices = @transform_3, window_bounds = array<i64: 16, 128>}, {transform_indices = @transform_4, window_bounds = array<i64: 1, 128, 128>}, {transform_indices = @transform_5, window_bounds = array<i64: 1, 3, 128>}, {transform_indices = @transform_6, window_bounds = array<i64: 1, 2, 128>}]} {
    %c0_i32 = arith.constant 0 : i32
    %0 = arith.cmpi eq, %arg1, %c0_i32 : i32
    %1 = arith.extui %0 : i1 to i32
    %c0_i32_0 = arith.constant 0 : i32
    %2 = arith.cmpi ne, %1, %c0_i32_0 : i32
    scf.if %2 {
      %c0_15 = arith.constant 0 : index
      %c0_16 = arith.constant 0 : index
      %37 = vector.load %arg2[%c0_15, %c0_16] : memref<32x128xbf16, #tpu.memory_space<vmem>>, vector<32x128xbf16>
      %c0_17 = arith.constant 0 : index
      %c0_18 = arith.constant 0 : index
      %38 = vector.load %arg3[%c0_17, %c0_18] : memref<128x128xbf16, #tpu.memory_space<vmem>>, vector<128x128xbf16>
      %cst_19 = arith.constant dense<0.000000e+00> : vector<32x128xf32>
      %39 = tpu.matmul %37, %38, %cst_19 {dimension_numbers = #tpu.dot_dimension_numbers<[1], [0], [0], [1], [0, 0, 1, 1], [], []>} : vector<32x128xbf16>, vector<128x128xbf16>, vector<32x128xf32> -> vector<32x128xf32>
      %c0_20 = arith.constant 0 : index
      %c0_21 = arith.constant 0 : index
      %40 = vector.load %arg4[%c0_20, %c0_21] : memref<3x128xf32, #tpu.memory_space<vmem>>, vector<1x128xf32>
      %41 = vector.broadcast %40 : vector<1x128xf32> to vector<32x128xf32>
      %42 = arith.addf %39, %41 : vector<32x128xf32>
      %43 = arith.mulf %42, %42 : vector<32x128xf32>
      %44 = arith.mulf %42, %43 : vector<32x128xf32>
      %cst_22 = arith.constant 4.471500e-02 : f32
      %45 = vector.broadcast %cst_22 : f32 to vector<32x128xf32>
      %46 = arith.mulf %45, %44 : vector<32x128xf32>
      %47 = arith.addf %42, %46 : vector<32x128xf32>
      %cst_23 = arith.constant 0.797884583 : f32
      %48 = vector.broadcast %cst_23 : f32 to vector<32x128xf32>
      %49 = arith.mulf %48, %47 : vector<32x128xf32>
      %50 = math.tanh %49 : vector<32x128xf32>
      %cst_24 = arith.constant 1.000000e+00 : f32
      %51 = vector.broadcast %cst_24 : f32 to vector<32x128xf32>
      %52 = arith.addf %51, %50 : vector<32x128xf32>
      %cst_25 = arith.constant 5.000000e-01 : f32
      %53 = vector.broadcast %cst_25 : f32 to vector<32x128xf32>
      %54 = arith.mulf %53, %52 : vector<32x128xf32>
      %55 = arith.mulf %42, %54 : vector<32x128xf32>
      %c1 = arith.constant 1 : index
      %c0_26 = arith.constant 0 : index
      %56 = vector.load %arg4[%c1, %c0_26] : memref<3x128xf32, #tpu.memory_space<vmem>>, vector<1x128xf32>
      %57 = vector.broadcast %56 : vector<1x128xf32> to vector<32x128xf32>
      %58 = arith.mulf %55, %57 : vector<32x128xf32>
      %c2 = arith.constant 2 : index
      %c0_27 = arith.constant 0 : index
      %59 = vector.load %arg4[%c2, %c0_27] : memref<3x128xf32, #tpu.memory_space<vmem>>, vector<1x128xf32>
      %60 = vector.broadcast %59 : vector<1x128xf32> to vector<32x128xf32>
      %61 = arith.addf %58, %60 : vector<32x128xf32>
      %c0_28 = arith.constant 0 : index
      %c0_29 = arith.constant 0 : index
      %62 = vector.load %arg5[%c0_28, %c0_29] : memref<16x128xf32, #tpu.memory_space<vmem>>, vector<16x128xf32>
      %63 = tpu.concatenate %62, %62 in 0 : vector<16x128xf32>, vector<16x128xf32> -> vector<32x128xf32>
      %64 = arith.addf %61, %63 : vector<32x128xf32>
      %c0_30 = arith.constant 0 : index
      %c0_31 = arith.constant 0 : index
      %65 = vector.load %arg9[%c0_30, %c0_31] : memref<32x128xf32, #tpu.memory_space<vmem>>, vector<32x128xf32>
      tpu.vector_store %arg9[%c0_30, %c0_31], %64 {strides = array<i32>} : memref<32x128xf32, #tpu.memory_space<vmem>>, vector<32x128xf32>,
    } else {
    }
    %c0 = arith.constant 0 : index
    %c0_1 = arith.constant 0 : index
    %c0_2 = arith.constant 0 : index
    %3 = vector.load %arg6[%c0, %c0_1, %c0_2] : memref<1x128x128xbf16, #tpu.memory_space<vmem>>, vector<1x128x128xbf16>
    %4 = vector.shape_cast %3 : vector<1x128x128xbf16> to vector<128x128xbf16>
    %c0_3 = arith.constant 0 : index
    %c0_4 = arith.constant 0 : index
    %c0_5 = arith.constant 0 : index
    %5 = vector.load %arg7[%c0_3, %c0_4, %c0_5] : memref<1x3x128xf32, #tpu.memory_space<vmem>>, vector<1x3x128xf32>
    %6 = vector.shape_cast %5 : vector<1x3x128xf32> to vector<3x128xf32>
    %c0_6 = arith.constant 0 : index
    %c0_7 = arith.constant 0 : index
    %7 = vector.load %arg9[%c0_6, %c0_7] : memref<32x128xf32, #tpu.memory_space<vmem>>, vector<32x128xf32>
    %8 = arith.truncf %7 : vector<32x128xf32> to vector<32x128xbf16>
    %cst = arith.constant dense<0.000000e+00> : vector<32x128xf32>
    %9 = tpu.matmul %8, %4, %cst {dimension_numbers = #tpu.dot_dimension_numbers<[1], [0], [0], [1], [0, 0, 1, 1], [], []>} : vector<32x128xbf16>, vector<128x128xbf16>, vector<32x128xf32> -> vector<32x128xf32>
    %10 = vector.extract_strided_slice %6 {offsets = [0, 0], sizes = [1, 128], strides = [1, 1]} : vector<3x128xf32> to vector<1x128xf32>
    %11 = vector.broadcast %10 : vector<1x128xf32> to vector<32x128xf32>
    %12 = arith.addf %9, %11 : vector<32x128xf32>
    %13 = arith.mulf %12, %12 : vector<32x128xf32>
    %14 = arith.mulf %12, %13 : vector<32x128xf32>
    %cst_8 = arith.constant 4.471500e-02 : f32
    %15 = vector.broadcast %cst_8 : f32 to vector<32x128xf32>
    %16 = arith.mulf %15, %14 : vector<32x128xf32>
    %17 = arith.addf %12, %16 : vector<32x128xf32>
    %cst_9 = arith.constant 0.797884583 : f32
    %18 = vector.broadcast %cst_9 : f32 to vector<32x128xf32>
    %19 = arith.mulf %18, %17 : vector<32x128xf32>
    %20 = math.tanh %19 : vector<32x128xf32>
    %cst_10 = arith.constant 1.000000e+00 : f32
    %21 = vector.broadcast %cst_10 : f32 to vector<32x128xf32>
    %22 = arith.addf %21, %20 : vector<32x128xf32>
    %cst_11 = arith.constant 5.000000e-01 : f32
    %23 = vector.broadcast %cst_11 : f32 to vector<32x128xf32>
    %24 = arith.mulf %23, %22 : vector<32x128xf32>
    %25 = arith.mulf %12, %24 : vector<32x128xf32>
    %26 = vector.extract_strided_slice %6 {offsets = [1, 0], sizes = [1, 128], strides = [1, 1]} : vector<3x128xf32> to vector<1x128xf32>
    %27 = vector.broadcast %26 : vector<1x128xf32> to vector<32x128xf32>
    %28 = arith.mulf %25, %27 : vector<32x128xf32>
    %29 = vector.extract_strided_slice %6 {offsets = [2, 0], sizes = [1, 128], strides = [1, 1]} : vector<3x128xf32> to vector<1x128xf32>
    %30 = vector.broadcast %29 : vector<1x128xf32> to vector<32x128xf32>
    %31 = arith.addf %28, %30 : vector<32x128xf32>
    %32 = arith.addf %7, %31 : vector<32x128xf32>
    %c0_12 = arith.constant 0 : index
    %c0_13 = arith.constant 0 : index
    %33 = vector.load %arg9[%c0_12, %c0_13] : memref<32x128xf32, #tpu.memory_space<vmem>>, vector<32x128xf32>
    tpu.vector_store %arg9[%c0_12, %c0_13], %32 {strides = array<i32>} : memref<32x128xf32, #tpu.memory_space<vmem>>, vector<32x128xf32>,
    %c1_i32 = arith.constant 1 : i32
    %34 = arith.cmpi eq, %arg1, %c1_i32 : i32
    %35 = arith.extui %34 : i1 to i32
    %c0_i32_14 = arith.constant 0 : i32
    %36 = arith.cmpi ne, %35, %c0_i32_14 : i32
    scf.if %36 {
      %c0_15 = arith.constant 0 : index
      %c0_16 = arith.constant 0 : index
      %37 = vector.load %arg9[%c0_15, %c0_16] : memref<32x128xf32, #tpu.memory_space<vmem>>, vector<16x128xf32>
      %38 = math.tanh %37 : vector<16x128xf32>
      %cst_17 = arith.constant dense<0.000000e+00> : vector<128xf32>
      %39 = vector.multi_reduction <add>, %38, %cst_17 [0] : vector<16x128xf32> to vector<128xf32>
      %40 = vector.shape_cast %39 : vector<128xf32> to vector<1x128xf32>
      %cst_18 = arith.constant 6.250000e-02 : f32
      %41 = vector.broadcast %cst_18 : f32 to vector<1x128xf32>
      %42 = arith.mulf %40, %41 : vector<1x128xf32>
      %c16 = arith.constant 16 : index
      %c0_19 = arith.constant 0 : index
      %43 = vector.load %arg9[%c16, %c0_19] : memref<32x128xf32, #tpu.memory_space<vmem>>, vector<16x128xf32>
      %44 = math.tanh %43 : vector<16x128xf32>
      %cst_20 = arith.constant dense<0.000000e+00> : vector<128xf32>
      %45 = vector.multi_reduction <add>, %44, %cst_20 [0] : vector<16x128xf32> to vector<128xf32>
      %46 = vector.shape_cast %45 : vector<128xf32> to vector<1x128xf32>
      %cst_21 = arith.constant 6.250000e-02 : f32
      %47 = vector.broadcast %cst_21 : f32 to vector<1x128xf32>
      %48 = arith.mulf %46, %47 : vector<1x128xf32>
      %49 = tpu.concatenate %42, %48 in 0 : vector<1x128xf32>, vector<1x128xf32> -> vector<2x128xf32>
      %c0_22 = arith.constant 0 : index
      %c0_23 = arith.constant 0 : index
      %c0_24 = arith.constant 0 : index
      %50 = vector.load %arg8[%c0_22, %c0_23, %c0_24] : memref<1x2x128xf32, #tpu.memory_space<vmem>>, vector<1x2x128xf32>
      %51 = vector.shape_cast %50 : vector<1x2x128xf32> to vector<2x128xf32>
      %52 = vector.shape_cast %49 : vector<2x128xf32> to vector<1x2x128xf32>
      tpu.vector_store %arg8[%c0_22, %c0_23, %c0_24], %52 {strides = array<i32>} : memref<1x2x128xf32, #tpu.memory_space<vmem>>, vector<1x2x128xf32>,
    } else {
    }
    return
  }
  func.func @transform_0(%arg0: i32, %arg1: i32) -> (i32, i32) {
    %c0_i32 = arith.constant 0 : i32
    %c0_i32_0 = arith.constant 0 : i32
    return %arg0, %c0_i32 : i32, i32
  }
  func.func @transform_1(%arg0: i32, %arg1: i32) -> (i32, i32) {
    %c0_i32 = arith.constant 0 : i32
    %c0_i32_0 = arith.constant 0 : i32
    %c0_i32_1 = arith.constant 0 : i32
    return %c0_i32, %c0_i32_0 : i32, i32
  }
  func.func @transform_2(%arg0: i32, %arg1: i32) -> (i32, i32) {
    %c0_i32 = arith.constant 0 : i32
    %c0_i32_0 = arith.constant 0 : i32
    %c0_i32_1 = arith.constant 0 : i32
    return %c0_i32, %c0_i32_0 : i32, i32
  }
  func.func @transform_3(%arg0: i32, %arg1: i32) -> (i32, i32) {
    %c0_i32 = arith.constant 0 : i32
    %c0_i32_0 = arith.constant 0 : i32
    %c0_i32_1 = arith.constant 0 : i32
    return %c0_i32, %c0_i32_0 : i32, i32
  }
  func.func @transform_4(%arg0: i32, %arg1: i32) -> (i32, i32, i32) {
    %c0_i32 = arith.constant 0 : i32
    %c0_i32_0 = arith.constant 0 : i32
    %c0_i32_1 = arith.constant 0 : i32
    return %arg1, %c0_i32, %c0_i32_0 : i32, i32, i32
  }
  func.func @transform_5(%arg0: i32, %arg1: i32) -> (i32, i32, i32) {
    %c0_i32 = arith.constant 0 : i32
    %c0_i32_0 = arith.constant 0 : i32
    %c0_i32_1 = arith.constant 0 : i32
    return %arg1, %c0_i32, %c0_i32_0 : i32, i32, i32
  }
  func.func @transform_6(%arg0: i32, %arg1: i32) -> (i32, i32, i32) {
    %c0_i32 = arith.constant 0 : i32
    %c0_i32_0 = arith.constant 0 : i32
    %c0_i32_1 = arith.constant 0 : i32
    return %arg0, %c0_i32, %c0_i32_0 : i32, i32, i32
  }
}

</mosaic_0001>

<bundles_post_ra>
// kernel: tpu_custom_call.1
= control target key start
LH: loop header
LB: loop body
LE: loop exit
PB: predicated region body
PF: predicated region fallthrough
CT: control target
= control target key end

     0   :  { %11 = vsyncpa [#allocation4], 0  ;;  %s1561_s0 = inlined_call_operand.hbm [shape: bf16[32,128], index: 0, kind: input, shape index: {}]   ;;  %s1562_s1 = inlined_call_operand.hbm [shape: bf16[128,128], index: 1, kind: input, shape index: {}]   ;;  %s1563_s2 = inlined_call_operand.hbm [shape: f32[3,128], index: 2, kind: input, shape index: {}]   ;;  %s1564_s3 = inlined_call_operand.vmem [shape: f32[16,128], index: 3, kind: input, shape index: {}]   ;;  %s1565_s4 = inlined_call_operand.hbm [shape: bf16[2,128,128], index: 4, kind: input, shape index: {}]   ;;  %s1566_s5 = inlined_call_operand.vmem [shape: f32[2,3,128], index: 5, kind: input, shape index: {}]   ;;  %s1567_s6 = inlined_call_operand.hbm [shape: f32[1,2,128], index: 6, kind: output, shape index: {}]  }
   0x1   :  { %12 = vsyncpa [#allocation7], 0 }
   0x2   :  { %13 = vsyncpa [#allocation10], 0 }
   0x3   :  { %15 = vsyncpa [#allocation10 + $0x1], 0 }
   0x4   :  { %16 = vsyncpa [#allocation5], 0  ;;  %s1352_s21 = smov 0   ;;  %s1354_s22 = smov 0  }
   0x5   :  { %s1356_s23 = smov 0   ;;  %s1358_s24 = smov 0  }
   0x6   :  { %s1360_s25 = smov 0   ;;  %s1362_s26 = smov 0  }
   0x7 LB: > { %s1568_s27 = sadd.s32 4294967295, %s1308_s26   ;;  %p143_p0 = scmp.ne.s32.totalorder %s1292_s22, %s1288_s21  ;;  %s1308_s26 = sphi %s1362_s26, %s22_s26   ;;  %s1304_s25 = sphi %s1360_s25, %s1583_s25   ;;  %s1300_s24 = sphi %s1358_s24, %s1582_s24   ;;  %s1296_s23 = sphi %s1356_s23, %s1581_s23   ;;  %s1292_s22 = sphi %s1354_s22, %s1580_s22   ;;  %s1288_s21 = sphi %s1352_s21, %s1579_s21  }
   0x8   : > { %p1384_p1 = scmp.eq.s32.totalorder %s1568_s27, 0  ;;  %p877_p2 = scmp.ge.s32.totalorder %s1308_s26, 1 }
   0x9   : > { %p206_p3 = scmp.lt.s32.totalorder %s1308_s26, 3  ;;  %s1310_s7 = smov [#allocation6]  }
   0xa   : > { %p1392_p4 = por %p1384_p1, %p143_p0  ;;  %s234_s8 = sshll.u32 %s1310_s7, 4  ;;  %s235_s8 = int_to_ptr.vmem [resolvable:$true] %s234_s8 }
   0xb   : > { %p1396_p5 = pnand %p877_p2, %p206_p3  ;;  %s1311_s10 = smov [#allocation3]  }
   0xc   : > { %s221_s11 = sshll.u32 %s1311_s10, 4  ;;  %s1127_s12 = scalar_lea.vmem %s235_s8, 1024  ;;  %s222_s11 = int_to_ptr.vmem [resolvable:$true] %s221_s11 }
   0xd   : > { %p997_p6 = pneg %p1396_p5  ;;  %p1128_p9 = scmp.ne.s32.totalorder %s235_s8, %s1127_s12 }
   0xe   : > { %p1135_p12 = scmp.lt.s32.totalorder %s235_s8, %s235_s8  ;;  %p1136_p13 = scmp.lt.s32.totalorder %s1127_s12, %s1127_s12 }
   0xf   : > { %p1404_p7 = pnand %p997_p6, %p1384_p1 }
  0x10   : > { %p1137_p0 = por %p1136_p13, %p1135_p12 }
  0x11   : > { %p1118_p8 = pneg %p1404_p7 }
  0x13   : > { %p1130_p10 = pnand %p1128_p9, %p1118_p8 }
  0x15   : > { %p1131_p11 = pneg %p1130_p10 }
  0x17   : > { %p1138_p2 = pnand %p1137_p0, %p1131_p11 }
  0x19   : > { %1141 = shalt.err (!%p1138_p2)
}
  0x1a   : > { %s1569_s13 = smov 64   ;;  %s1313_s14 = smov 4  }
  0x1b   : > { %1003 = dma.hbm_to_vmem [thread:$0]  (!%p1404_p7), %s1562_s1, 1024, %s235_s8, [#allocation7], %s1569_s13, %s1569_s13, %s1313_s14  }
  0x1c   : > { %s1314_s17 = smov [#allocation8]   ;;  %s1153_s19 = scalar_lea.vmem %s222_s11, 256 }
  0x1d   : > { %s248_s18 = sshll.u32 %s1314_s17, 4  ;;  %p1154_p3 = scmp.ne.s32.totalorder %s222_s11, %s1153_s19  ;;  %s249_s18 = int_to_ptr.vmem [resolvable:$true] %s248_s18 }
  0x1e   : > { %p1161_p10 = scmp.lt.s32.totalorder %s222_s11, %s222_s11  ;;  %p1162_p11 = scmp.lt.s32.totalorder %s1153_s19, %s1153_s19 }
  0x1f   : > { %p1156_p6 = pnand %p1154_p3, %p1118_p8 }
  0x20   : > { %p1163_p12 = por %p1162_p11, %p1161_p10 }
  0x21   : > { %p1157_p9 = pneg %p1156_p6 }
  0x23   : > { %p1164_p13 = pnand %p1163_p12, %p1157_p9 }
  0x25   : > { %1167 = shalt.err (!%p1164_p13)
}
  0x26   : > { %1000 = dma.hbm_to_vmem [thread:$0]  (!%p1404_p7), %s1561_s0, 256, %s222_s11, [#allocation4], %s1569_s13, %s1569_s13, %s1313_s14  }
  0x27   : > { %s1179_s7 = scalar_lea.vmem %s249_s18, 64  ;;  %p1187_p6 = scmp.lt.s32.totalorder %s249_s18, %s249_s18 }
  0x28   : > { %p1180_p0 = scmp.ne.s32.totalorder %s249_s18, %s1179_s7  ;;  %p1188_p9 = scmp.lt.s32.totalorder %s1179_s7, %s1179_s7 }
  0x2a   : > { %p1182_p2 = pnand %p1180_p0, %p1118_p8  ;;  %p1189_p10 = por %p1188_p9, %p1187_p6 }
  0x2c   : > { %p1183_p3 = pneg %p1182_p2 }
  0x2e   : > { %p1190_p11 = pnand %p1189_p10, %p1183_p3 }
  0x30   : > { %1193 = shalt.err (!%p1190_p11)
}
  0x31   : > { %1006 = dma.hbm_to_vmem [thread:$0]  (!%p1404_p7), %s1563_s2, 64, %s249_s18, [#allocation7]  }
  0x32   : > { %s31_s11 = sadd.s32 1, %s1304_s25  ;;  %p137_p8 = scmp.ne.s32.totalorder %s1296_s23, %s1292_s22 }
  0x33   : > { %p32_p12 = scmp.ge.s32.totalorder %s31_s11, 2  ;;  %p138_p13 = scmp.eq.s32.totalorder %s1308_s26, 0 }
  0x34   : > { %s130_s12 = sadd.s32 1, %s1296_s23  ;;  %s262_s9 = sand.u32 1, %s1296_s23  }
  0x35   : > { %s1585_s11 = smov (%p32_p12, %s31_s11), 0  ;;  %p139_p0 = por %p138_p13, %p137_p8 }
  0x36   : > { %p1014_p2 = scmp.lt.s32.totalorder %s1308_s26, 2  ;;  %s127_s15 = ssub.s32 %s1304_s25, %s1585_s11 }
  0x37   : > { %s882_s16 = sshll.u32 %s262_s9, 6  ;;  %p128_p3 = scmp.eq.s32.totalorder %s127_s15, 0 }
  0x38   : > { %s918_s17 = sshll.u32 %s1304_s25, 10  ;;  %s266_s19 = scalar_lea.vmem [#allocation9], %s882_s16 }
  0x39   : > { %s273_s20 = sshll.u32 %s266_s19, 4  ;;  %s272_s8 = scalar_lea.hbm %s1565_s4, %s918_s17  ;;  %s274_s20 = int_to_ptr.vmem [resolvable:$true] %s273_s20 }
  0x3a   : > { %s1453_s21 = scalar_select %p128_p3, %s1296_s23, %s130_s12  }
  0x3b   : > { %p1458_p7 = pnand %p1014_p2, %p139_p0  ;;  %s263_s27 = scalar_lea.sflag [#allocation10], %s262_s9 }
  0x3c   : > { %s1207_s13 = scalar_lea.vmem %s274_s20, 1024  ;;  %s1315_s15 = smov [#allocation9]  }
  0x3d   : > { %p1196_p6 = pneg %p1458_p7  ;;  %p1208_p9 = scmp.ne.s32.totalorder %s274_s20, %s1207_s13 }
  0x3e   : > { %s1212_s12 = sshll.u32 %s1315_s15, 4  ;;  %s1213_s12 = int_to_ptr.vmem [resolvable:$false] %s1212_s12 }
  0x3f   : > { %p1210_p10 = pnand %p1208_p9, %p1196_p6  ;;  %s1214_s16 = scalar_lea.vmem %s1213_s12, 2048 }
  0x40   : > { %p1215_p8 = scmp.lt.s32.totalorder %s274_s20, %s1213_s12  ;;  %p1216_p12 = scmp.lt.s32.totalorder %s1214_s16, %s1207_s13 }
  0x41   : > { %p1211_p11 = pneg %p1210_p10 }
  0x42   : > { %p1217_p13 = por %p1216_p12, %p1215_p8 }
  0x44   : > { %p1218_p3 = pnand %p1217_p13, %p1211_p11 }
  0x46   : > { %1221 = shalt.err (!%p1218_p3)
}
  0x47   : > { %s1575_s17 = smov 64   ;;  %292 = sbr.rel (%p1396_p5) target bundleno = 689 (0x2b1), region = 44 }
  0x48   : > { %1010 = dma.hbm_to_vmem [thread:$0]  (!%p1458_p7), %s272_s8, 1024, %s274_s20, %s263_s27, %s1575_s17, %s1575_s17, %s1313_s14  }
  0x4c   : > { %1271 = dma.done.wait (%p1384_p1), [#allocation4], 256  }
  0x4d   : > { %1273 = vsyncadd (%p1384_p1), [#allocation4], 4294967040 }
  0x4e   : > { %1275 = dma.done.wait (%p1384_p1), [#allocation7], 1088  }
  0x4f   : > { %1277 = vsyncadd (%p1384_p1), [#allocation7], 4294966208  ;;  %s306_s13 = sand.u32 1, %s1292_s22  }
  0x50   : > { %s889_s9 = sshll.u32 %s306_s13, 6  ;;  %s307_s27 = scalar_lea.sflag [#allocation10], %s306_s13 }
  0x51   : > { %s1480_s14 = scalar_lea.vmem [#allocation9], %s889_s9 }
  0x52   : > { %1279 = dma.done.wait (%p1392_p4), %s307_s27, 1024  }
  0x53   : > { %1281 = vsyncadd (%p1392_p4), %s307_s27, 4294966272  ;;  %p339_p5 = scmp.lt.s32.totalorder %s1300_s24, 1  ;;  %p891_p1 = scmp.ne.s32.totalorder %s1300_s24, 0 }
  0x55   : > { %s340_s30 = scalar_select %p339_p5, %s1300_s24, 1 }
  0x56   : > { %347 = sbr.rel (%p891_p1) target bundleno = 362 (0x16a), region = 64 }
  0x57   : > { %s890_s19 = sshll.u32 %s340_s30, 2 }
  0x58   : > { %s1491_s18 = scalar_lea.vmem %s1566_s5, %s890_s19 }
  0x5b   : > { %v1074_v0 = vld [vmem:[#allocation6 + $0x38] sm:$0xff]   ;;  %v1075_v1 = vld [vmem:[#allocation6 + $0x30] sm:$0xff]   ;;  %v1076_v2 = vld [vmem:[#allocation6 + $0x28] sm:$0xff]  }
  0x5c   : > { %939 = vmatprep.subr.bf16.mxu0 %v1074_v0  ;;  %v1077_v3 = vld [vmem:[#allocation6 + $0x20] sm:$0xff]   ;;  %v1082_v4 = vld [vmem:[#allocation3] sm:$0xff]   ;;  %v1078_v5 = vld [vmem:[#allocation6 + $0x18] sm:$0xff]  }
  0x5d   : > { %940 = vmatpush3.bf16.msra.mxu0 %v1074_v0  ;;  %955 = vmatprep.mubr.bf16.mxu0 %v1082_v4  ;;  %v1079_v6 = vld [vmem:[#allocation6 + $0x10] sm:$0xff]   ;;  %v1080_v7 = vld [vmem:[#allocation6 + $0x8] sm:$0xff]   ;;  %v1081_v8 = vld [vmem:[#allocation6] sm:$0xff]  }
  0x5e   : > { %941 = vmatprep.subr.bf16.mxu0 %v1075_v1  ;;  %v1083_v9 = vld [vmem:[#allocation3 + $0x8] sm:$0xff]   ;;  %v892_v10 = vld [vmem:[#allocation8] ss:$0 sm:$0xff]  ;;  %v903_v45 = vld [vmem:[#allocation8 + $0x1] ss:$0 sm:$0xff] }
  0x5f   : > { %v904_v50 = vld [vmem:[#allocation8 + $0x2] ss:$0 sm:$0xff]  ;;  %v536_v55 = vld [vmem:[%s1564_s3] sm:$0xff]  ;;  %v537_v0 = vld [vmem:[%s1564_s3 + $0x8] sm:$0xff] }
  0x61   : > { %942 = vmatpush3.bf16.msra.mxu0 %v1075_v1 }
  0x62   : > { %943 = vmatprep.subr.bf16.mxu0 %v1076_v2 }
  0x65   : > { %944 = vmatpush3.bf16.msra.mxu0 %v1076_v2 }
  0x66   : > { %945 = vmatprep.subr.bf16.mxu0 %v1077_v3 }
  0x69   : > { %946 = vmatpush3.bf16.msra.mxu0 %v1077_v3 }
  0x6a   : > { %947 = vmatprep.subr.bf16.mxu0 %v1078_v5 }
  0x6d   : > { %948 = vmatpush3.bf16.msra.mxu0 %v1078_v5 }
  0x6e   : > { %949 = vmatprep.subr.bf16.mxu0 %v1079_v6 }
  0x71   : > { %950 = vmatpush3.bf16.msra.mxu0 %v1079_v6 }
  0x72   : > { %951 = vmatprep.subr.bf16.mxu0 %v1080_v7 }
  0x75   : > { %952 = vmatpush3.bf16.msra.mxu0 %v1080_v7 }
  0x76   : > { %953 = vmatprep.subr.bf16.mxu0 %v1081_v8 }
  0x79   : > { %954 = vmatpush3.bf16.msra.mxu0 %v1081_v8 }
  0x7c   : > { %956 = vmatmul.mubr.bf16.vlgmr.msra.gmra.mxu0 %v1083_v9 }
 0x13c   : > { %v957_v11 = vpop.f32.mrf.mxu0 }
 0x13d   : > { %v476_v12 = vadd.f32 %v957_v11, %v892_v10 }
 0x13e   : > { %v467_v13 = vpop.f32.mrf.mxu0 }
 0x13f   : > { %v484_v14 = vmul.f32 %v476_v12, %v476_v12  ;;  %v468_v15 = vadd.f32 %v892_v10, %v467_v13 }
 0x140   : > { %v958_v16 = vpop.f32.mrf.mxu0 }
 0x141   : > { %v488_v17 = vmul.f32 %v484_v14, %v476_v12  ;;  %v482_v18 = vmul.f32 %v468_v15, %v468_v15  ;;  %v479_v19 = vadd.f32 %v958_v16, %v892_v10 }
 0x142   : > { %v470_v20 = vpop.f32.mrf.mxu0 }
 0x143   : > { %v492_v21 = vmul.f32 0.044715, %v488_v17  ;;  %v486_v22 = vmul.f32 %v482_v18, %v468_v15  ;;  %v485_v23 = vmul.f32 %v479_v19, %v479_v19  ;;  %v471_v24 = vadd.f32 %v892_v10, %v470_v20 }
 0x145   : > { %v496_v25 = vadd.f32 %v492_v21, %v476_v12  ;;  %v490_v26 = vmul.f32 0.044715, %v486_v22  ;;  %v489_v27 = vmul.f32 %v485_v23, %v479_v19  ;;  %v483_v28 = vmul.f32 %v471_v24, %v471_v24 }
 0x147   : > { %v500_v29 = vmul.f32 0.7978846, %v496_v25  ;;  %v494_v30 = vadd.f32 %v490_v26, %v468_v15  ;;  %v493_v31 = vmul.f32 0.044715, %v489_v27  ;;  %v487_v32 = vmul.f32 %v483_v28, %v471_v24 }
 0x149   : > { %1084 = vtanh.f32 %v500_v29  ;;  %v498_v33 = vmul.f32 0.7978846, %v494_v30  ;;  %v497_v34 = vadd.f32 %v493_v31, %v479_v19  ;;  %v491_v35 = vmul.f32 0.044715, %v487_v32 }
 0x14b   : > { %1086 = vtanh.f32 %v498_v33  ;;  %v501_v36 = vmul.f32 0.7978846, %v497_v34  ;;  %v495_v37 = vadd.f32 %v491_v35, %v471_v24 }
 0x14d   : > { %1088 = vtanh.f32 %v501_v36  ;;  %v499_v38 = vmul.f32 0.7978846, %v495_v37 }
 0x14f   : > { %1090 = vtanh.f32 %v499_v38 }
 0x156   : > { %v1085_v39 = vpop.eup %1084 }
 0x157   : > { %v508_v40 = vadd.f32 1.0, %v1085_v39 }
 0x158   : > { %v1087_v41 = vpop.eup %1086 }
 0x159   : > { %v512_v42 = vmul.f32 0.5, %v508_v40  ;;  %v506_v43 = vadd.f32 1.0, %v1087_v41 }
 0x15a   : > { %v1089_v44 = vpop.eup %1088 }
 0x15b   : > { %v516_v46 = vmul.f32 %v512_v42, %v476_v12  ;;  %v510_v47 = vmul.f32 0.5, %v506_v43  ;;  %v509_v48 = vadd.f32 1.0, %v1089_v44 }
 0x15c   : > { %v1091_v49 = vpop.eup %1090 }
 0x15d   : > { %v525_v51 = vmul.f32 %v903_v45, %v516_v46  ;;  %v514_v52 = vmul.f32 %v510_v47, %v468_v15  ;;  %v513_v53 = vmul.f32 0.5, %v509_v48  ;;  %v507_v54 = vadd.f32 1.0, %v1091_v49 }
 0x15f   : > { %v534_v56 = vadd.f32 %v904_v50, %v525_v51  ;;  %v523_v57 = vmul.f32 %v903_v45, %v514_v52  ;;  %v517_v58 = vmul.f32 %v513_v53, %v479_v19  ;;  %v511_v59 = vmul.f32 0.5, %v507_v54 }
 0x161   : > { %v540_v60 = vadd.f32 %v536_v55, %v534_v56  ;;  %v532_v61 = vadd.f32 %v904_v50, %v523_v57  ;;  %v526_v62 = vmul.f32 %v903_v45, %v517_v58  ;;  %v515_v63 = vmul.f32 %v511_v59, %v471_v24 }
 0x163   : > { %544 = vst [vmem:[#allocation2 + $0x18] sm:$0xff] %v540_v60  ;;  %v538_v1 = vadd.f32 %v536_v55, %v532_v61  ;;  %v535_v2 = vadd.f32 %v904_v50, %v526_v62  ;;  %v524_v3 = vmul.f32 %v903_v45, %v515_v63 }
 0x165   : > { %542 = vst [vmem:[#allocation2 + $0x10] sm:$0xff] %v538_v1  ;;  %v541_v4 = vadd.f32 %v537_v0, %v535_v2  ;;  %v533_v5 = vadd.f32 %v904_v50, %v524_v3 }
 0x167   : > { %545 = vst [vmem:[#allocation2 + $0x8] sm:$0xff] %v541_v4  ;;  %v539_v6 = vadd.f32 %v537_v0, %v533_v5 }
 0x169   : > { %543 = vst [vmem:[#allocation2] sm:$0xff] %v539_v6 }
 0x16a PF: > { %v1092_v7 = vld [vmem:[%s1480_s14 + $0x38] sm:$0xff]   ;;  %v1093_v8 = vld [vmem:[%s1480_s14 + $0x30] sm:$0xff]   ;;  %v1094_v9 = vld [vmem:[%s1480_s14 + $0x28] sm:$0xff]   ;;  %v569_v21 = vlaneseq  ;;  %p913_p4 = scmp.ne.s32.totalorder %s1300_s24, 1 }
 0x16b   : > { %959 = vmatprep.subr.bf16.mxu0 %v1092_v7  ;;  %v1095_v10 = vld [vmem:[%s1480_s14 + $0x20] sm:$0xff]   ;;  %v1096_v14 = vld [vmem:[%s1480_s14 + $0x18] sm:$0xff]   ;;  %v1097_v15 = vld [vmem:[%s1480_s14 + $0x10] sm:$0xff]  }
 0x16c   : > { %960 = vmatpush3.bf16.msra.mxu0 %v1092_v7  ;;  %v1504_v11 = vld [vmem:[#allocation2 + $0x10] sm:$0xff]  ;;  %v1098_v16 = vld [vmem:[%s1480_s14 + $0x8] sm:$0xff]   ;;  %v570_v22 = vshrl.u32 %v569_v21, 7 }
 0x16d   : > { %961 = vmatprep.subr.bf16.mxu0 %v1093_v8  ;;  %v1099_v17 = vld [vmem:[%s1480_s14] sm:$0xff]   ;;  %v562_v24 = vld [vmem:[%s1491_s18] sm:$0x7] }
 0x16e   : > { %v1514_v18 = vld [vmem:[#allocation2 + $0x18] sm:$0xff]  ;;  %v1516_v19 = vld [vmem:[#allocation2 + $0x8] sm:$0xff]  ;;  %v571_v23 = vsub.s32 0, %v570_v22  ;;  %v708_v54 = vsub.s32 1, %v570_v22  ;;  %v716_v57 = vsub.s32 2, %v570_v22 }
 0x16f   : > { %v568_v20 = vpack.c.bf16 %v1516_v19, %v1514_v18 }
 0x170   : > { %962 = vmatpush3.bf16.msra.mxu0 %v1093_v8  ;;  %v1506_v12 = vld [vmem:[#allocation2] sm:$0xff]  ;;  %v572_v25 = vrot.slane %v562_v24, %v571_v23  ;;  %v709_v60 = vrot.slane %v562_v24, %v708_v54  ;;  %v717_v0 = vrot.slane %v562_v24, %v716_v57 }
 0x171   : > { %963 = vmatprep.subr.bf16.mxu0 %v1094_v9  ;;  %v567_v13 = vpack.c.bf16 %v1506_v12, %v1504_v11 }
 0x173   : > { %975 = vmatprep.mubr.bf16.mxu0 %v567_v13 }
 0x174   : > { %964 = vmatpush3.bf16.msra.mxu0 %v1094_v9 }
 0x175   : > { %965 = vmatprep.subr.bf16.mxu0 %v1095_v10 }
 0x178   : > { %966 = vmatpush3.bf16.msra.mxu0 %v1095_v10 }
 0x179   : > { %967 = vmatprep.subr.bf16.mxu0 %v1096_v14 }
 0x17c   : > { %968 = vmatpush3.bf16.msra.mxu0 %v1096_v14 }
 0x17d   : > { %969 = vmatprep.subr.bf16.mxu0 %v1097_v15 }
 0x180   : > { %970 = vmatpush3.bf16.msra.mxu0 %v1097_v15 }
 0x181   : > { %971 = vmatprep.subr.bf16.mxu0 %v1098_v16 }
 0x184   : > { %972 = vmatpush3.bf16.msra.mxu0 %v1098_v16 }
 0x185   : > { %973 = vmatprep.subr.bf16.mxu0 %v1099_v17 }
 0x188   : > { %974 = vmatpush3.bf16.msra.mxu0 %v1099_v17 }
 0x18b   : > { %976 = vmatmul.mubr.bf16.vlgmr.msra.gmra.mxu0 %v568_v20 }
 0x24b   : > { %v977_v26 = vpop.f32.mrf.mxu0 }
 0x24c   : > { %v664_v27 = vadd.f32 %v977_v26, %v572_v25 }
 0x24d   : > { %v655_v28 = vpop.f32.mrf.mxu0 }
 0x24e   : > { %v672_v29 = vmul.f32 %v664_v27, %v664_v27  ;;  %v656_v30 = vadd.f32 %v655_v28, %v572_v25 }
 0x24f   : > { %v978_v31 = vpop.f32.mrf.mxu0 }
 0x250   : > { %v676_v32 = vmul.f32 %v672_v29, %v664_v27  ;;  %v670_v33 = vmul.f32 %v656_v30, %v656_v30  ;;  %v667_v34 = vadd.f32 %v978_v31, %v572_v25 }
 0x251   : > { %v658_v35 = vpop.f32.mrf.mxu0 }
 0x252   : > { %v680_v36 = vmul.f32 0.044715, %v676_v32  ;;  %v674_v37 = vmul.f32 %v670_v33, %v656_v30  ;;  %v673_v38 = vmul.f32 %v667_v34, %v667_v34  ;;  %v659_v39 = vadd.f32 %v658_v35, %v572_v25 }
 0x254   : > { %v684_v40 = vadd.f32 %v680_v36, %v664_v27  ;;  %v678_v41 = vmul.f32 0.044715, %v674_v37  ;;  %v677_v42 = vmul.f32 %v673_v38, %v667_v34  ;;  %v671_v43 = vmul.f32 %v659_v39, %v659_v39 }
 0x256   : > { %v688_v44 = vmul.f32 0.7978846, %v684_v40  ;;  %v682_v45 = vadd.f32 %v678_v41, %v656_v30  ;;  %v681_v46 = vmul.f32 0.044715, %v677_v42  ;;  %v675_v47 = vmul.f32 %v671_v43, %v659_v39 }
 0x258   : > { %1100 = vtanh.f32 %v688_v44  ;;  %v686_v48 = vmul.f32 0.7978846, %v682_v45  ;;  %v685_v49 = vadd.f32 %v681_v46, %v667_v34  ;;  %v679_v50 = vmul.f32 0.044715, %v675_v47 }
 0x25a   : > { %1102 = vtanh.f32 %v686_v48  ;;  %v689_v51 = vmul.f32 0.7978846, %v685_v49  ;;  %v683_v52 = vadd.f32 %v679_v50, %v659_v39 }
 0x25c   : > { %1104 = vtanh.f32 %v689_v51  ;;  %v687_v53 = vmul.f32 0.7978846, %v683_v52 }
 0x25e   : > { %1106 = vtanh.f32 %v687_v53 }
 0x265   : > { %v1101_v55 = vpop.eup %1100 }
 0x266   : > { %v696_v56 = vadd.f32 1.0, %v1101_v55 }
 0x267   : > { %v1103_v58 = vpop.eup %1102 }
 0x268   : > { %v700_v59 = vmul.f32 0.5, %v696_v56  ;;  %v694_v61 = vadd.f32 1.0, %v1103_v58 }
 0x269   : > { %v1105_v62 = vpop.eup %1104 }
 0x26a   : > { %v704_v63 = vmul.f32 %v700_v59, %v664_v27  ;;  %v698_v1 = vmul.f32 0.5, %v694_v61  ;;  %v697_v2 = vadd.f32 1.0, %v1105_v62 }
 0x26b   : > { %v1107_v3 = vpop.eup %1106 }
 0x26c   : > { %v712_v4 = vmul.f32 %v709_v60, %v704_v63  ;;  %v702_v5 = vmul.f32 %v698_v1, %v656_v30  ;;  %v701_v6 = vmul.f32 0.5, %v697_v2  ;;  %v695_v7 = vadd.f32 1.0, %v1107_v3 }
 0x26e   : > { %v720_v8 = vadd.f32 %v717_v0, %v712_v4  ;;  %v710_v9 = vmul.f32 %v709_v60, %v702_v5  ;;  %v705_v10 = vmul.f32 %v701_v6, %v667_v34  ;;  %v699_v13 = vmul.f32 0.5, %v695_v7 }
 0x270   : > { %v724_v14 = vadd.f32 %v720_v8, %v1514_v18  ;;  %v718_v15 = vadd.f32 %v717_v0, %v710_v9  ;;  %v713_v16 = vmul.f32 %v709_v60, %v705_v10  ;;  %v703_v17 = vmul.f32 %v699_v13, %v659_v39 }
 0x272   : > { %728 = vst [vmem:[#allocation2 + $0x18] sm:$0xff] %v724_v14  ;;  %v722_v20 = vadd.f32 %v718_v15, %v1504_v11  ;;  %v721_v21 = vadd.f32 %v717_v0, %v713_v16  ;;  %v711_v22 = vmul.f32 %v709_v60, %v703_v17 }
 0x274   : > { %726 = vst [vmem:[#allocation2 + $0x10] sm:$0xff] %v722_v20  ;;  %v725_v23 = vadd.f32 %v721_v21, %v1516_v19  ;;  %v719_v24 = vadd.f32 %v717_v0, %v711_v22  ;;  %733 = sbr.rel (%p913_p4) target bundleno = 674 (0x2a2), region = 68 }
 0x276   : > { %729 = vst [vmem:[#allocation2 + $0x8] sm:$0xff] %v725_v23  ;;  %v723_v25 = vadd.f32 %v719_v24, %v1506_v12 }
 0x278   : > { %727 = vst [vmem:[#allocation2] sm:$0xff] %v723_v25 }
 0x279   : > { %v746_v27 = vld [vmem:[#allocation2 + $0x18] sm:$0xff]  ;;  %vm758_vm0 = vcmask 1040384  }
 0x27b   : > { %v734_v18 = vld [vmem:[#allocation2 + $0x10] sm:$0xff] }
 0x27c   : > { %1108 = vtanh.f32 %v734_v18 }
 0x27d   : > { %v747_v28 = vld [vmem:[#allocation2 + $0x8] sm:$0xff] }
 0x27f   : > { %v735_v26 = vld [vmem:[#allocation2] sm:$0xff] }
 0x280   : > { %1110 = vtanh.f32 %v735_v26 }
 0x281   : > { %1112 = vtanh.f32 %v746_v27 }
 0x282   : > { %1114 = vtanh.f32 %v747_v28 }
 0x289   : > { %v1109_v11 = vpop.eup %1108 }
 0x28d   : > { %v1111_v29 = vpop.eup %1110 }
 0x28e   : > { %v1113_v30 = vpop.eup %1112  ;;  %v738_v19 = vadd.f32 %v1111_v29, %v1109_v11 }
 0x28f   : > { %v1115_v31 = vpop.eup %1114 }
 0x290   : > { %v739_v32 = vrot.slane %v738_v19, 4  ;;  %v750_v33 = vadd.f32 %v1115_v31, %v1113_v30 }
 0x292   : > { %v740_v12 = vadd.f32 %v739_v32, %v738_v19  ;;  %v751_v34 = vrot.slane %v750_v33, 4 }
 0x294   : > { %v741_v35 = vrot.slane %v740_v12, 2  ;;  %v752_v36 = vadd.f32 %v751_v34, %v750_v33 }
 0x296   : > { %v742_v37 = vadd.f32 %v741_v35, %v740_v12  ;;  %v753_v38 = vrot.slane %v752_v36, 2 }
 0x298   : > { %v743_v39 = vrot.slane %v742_v37, 1  ;;  %v754_v40 = vadd.f32 %v753_v38, %v752_v36 }
 0x29a   : > { %v744_v41 = vadd.f32 %v743_v39, %v742_v37  ;;  %v755_v42 = vrot.slane %v754_v40, 1 }
 0x29c   : > { %v745_v43 = vmul.f32 0.0625, %v744_v41  ;;  %v756_v44 = vadd.f32 %v755_v42, %v754_v40 }
 0x29e   : > { %v757_v45 = vmul.f32 0.0625, %v756_v44 }
 0x2a0   : > { %v759_v46 = vsel %vm758_vm0, %v745_v43, %v757_v45 }
 0x2a1   : > { %760 = vst [vmem:[#allocation11] sm:$0x3] %v759_v46 }
 0x2a2 PF: > { %s1576_s24 = sadd.s32 4294967295, %s1308_s26   ;;  %s1316_s12 = smov [#allocation11]  }
 0x2a3   : > { %p1528_p0 = scmp.eq.s32.totalorder %s1576_s24, 1  ;;  %s770_s16 = sshll.u32 %s1316_s12, 4  ;;  %s771_s16 = int_to_ptr.vmem [resolvable:$true] %s770_s16 }
 0x2a4   : > { %s1222_s17 = scalar_lea.vmem %s771_s16, 32  ;;  %p1229_p9 = scmp.lt.s32.totalorder %s771_s16, %s771_s16 }
 0x2a5   : > { %p1223_p2 = scmp.ne.s32.totalorder %s771_s16, %s1222_s17  ;;  %p1230_p10 = scmp.lt.s32.totalorder %s1222_s17, %s1222_s17 }
 0x2a7   : > { %p1224_p7 = pnand %p1223_p2, %p1528_p0  ;;  %p1231_p11 = por %p1230_p10, %p1229_p9 }
 0x2a9   : > { %p1225_p6 = pneg %p1224_p7 }
 0x2ab   : > { %p1232_p8 = pnand %p1231_p11, %p1225_p6 }
 0x2ad   : > { %1235 = shalt.err (!%p1232_p8)
}
 0x2ae   : > { %994 = dma.vmem_to_hbm [thread:$0]  (%p1528_p0), %s771_s16, 32, %s1567_s6, [#allocation5]  }
 0x2af   : > { %1283 = dma.done.wait (%p1528_p0), [#allocation5], 32  }
 0x2b0   : > { %1285 = vsyncadd (%p1528_p0), [#allocation5], 4294967264 }
 0x2b1 PF: > { %s22_s26 = sadd.s32 1, %s1308_s26   ;;  %s1578_s27 = smov %s1453_s21 }
 0x2b2   : > { %p19_p12 = scmp.ge.s32.totalorder %s22_s26, 4   ;;  %s1579_s21 = smov %s1292_s22 }
 0x2b3   : > { %s1580_s22 = smov %s1296_s23  ;;  %s1581_s23 = smov %s1578_s27 }
 0x2b4   : > { %s1582_s24 = smov %s1304_s25  ;;  %s1583_s25 = smov %s1585_s11 }
 0x2b5   :  { %21 = sbr.rel (!%p19_p12) target bundleno = 7 (0x7), region = 107 }
 0x2ba   :  { %783 = vsyncpa [#allocation4], 1 }
 0x2bb   :  { %785 = vsyncpa [#allocation4 + $0x1], 1 }
 0x2bc   :  { %786 = vsyncpa [#allocation7], 1 }
 0x2bd   :  { %787 = vsyncpa [#allocation10], 1 }
 0x2be   :  { %789 = vsyncpa [#allocation10 + $0x1], 1 }
 0x2bf   :  { %790 = vsyncpa [#allocation5], 1 }
 0x2c0   :  { %792 = vsyncpa [#allocation5 + $0x1], 1 }

</bundles_post_ra>
